<compile_context>
chip_gen: v7x
topology: tpu7x:2x2x1
jax: 0.10.0
libtpu: 0.0.40
codegen_flags: <defaults>
</compile_context>

<pallas_src>
import jax
import jax.numpy as jnp
from jax.experimental import pallas as pl
from jax.experimental.pallas import tpu as pltpu

F1 = 8            # temporal feature maps (f1)
F2 = 2            # ts_conv output channels (f2); classifier in = 128*F2
D = 1             # depth multiplier (default)
KLEN = 3          # kernel_length
N_SCALE = 4
STRIDES = (1, 2, 4, 8)
BN_EPS = 1e-5


def _elu(z):
    # overflow-safe ELU: exp only sees z <= 0
    return jnp.where(z > 0, z, jnp.exp(jnp.minimum(z, 0.0)) - 1.0)


# ---------------------------------------------------------------------------
# The fused kernel: one batch sample per grid step.
# ---------------------------------------------------------------------------
def _mgif_kernel(x_ref, w_ref, ts_ref, tsb_ref, wct_ref, bc_ref, out_ref):
    xs = x_ref[0]                                       # (12C+1, Tout) tap stack (+ ones row)
    # temp conv + BN1 + depthwise spatial conv + BN2 for all 4 scales in one
    # block-diagonal matmul; the per-feature bias rides the ones-row.
    z = jnp.dot(w_ref[...], xs, preferred_element_type=jnp.float32)   # (4*F1, Tout)
    z = _elu(z)                                         # Dropout: eval-mode identity
    # 1x1 ts_conv per scale + cross-scale downsample-adds == one matmul.
    u = jnp.dot(ts_ref[...], z, preferred_element_type=jnp.float32) + tsb_ref[...]  # (F2, Tout)
    # classifier Linear(F2*Tout, n_class) on the f-major/t-minor flatten + softmax.
    logits = bc_ref[...]                                # (1, n_class)
    for g in range(u.shape[0]):                         # F2 is tiny & static -> unrolled
        logits = logits + jnp.dot(u[g:g + 1, :], wct_ref[g],
                                  preferred_element_type=jnp.float32)
    m = jnp.max(logits, axis=-1, keepdims=True)
    e = jnp.exp(logits - m)
    out_ref[0] = e / jnp.sum(e, axis=-1, keepdims=True)


# ---------------------------------------------------------------------------
# Parameter folding (plain JAX, runs once per call, negligible).
# ---------------------------------------------------------------------------
def fold_params(p):
    a1 = p['g1'] / jnp.sqrt(p['v1'] + BN_EPS)           # (4, F1)
    c1 = p['b1'] - p['m1'] * a1
    a2 = p['g2'] / jnp.sqrt(p['v2'] + BN_EPS)
    c2 = p['b2'] - p['m2'] * a2
    gain = (a2 * a1)[:, :, None]                        # (4, F1, 1)
    # per scale: W_s[f, k*C + c] = a2*a1*tw[f,k]*sw[f,c]   (tap order: left, center, right)
    w_scale = jnp.concatenate(
        [gain * p['tw'][:, :, k:k + 1] * p['sw'] for k in range(KLEN)], axis=-1)   # (4, F1, 3C)
    bias = a2 * (c1 * jnp.sum(p['sw'], axis=-1) + p['sb']) + c2                     # (4, F1)

    n_s, f1, c3 = w_scale.shape
    w_all = jnp.zeros((n_s * f1, n_s * c3), jnp.float32)      # block-diagonal over scales
    for s in range(n_s):
        w_all = w_all.at[s * f1:(s + 1) * f1, s * c3:(s + 1) * c3].set(w_scale[s])
    w_aug = jnp.concatenate([w_all, bias.reshape(n_s * f1, 1)], axis=1)   # (4F1, 12C+1)

    ts_all = jnp.concatenate([p['tsw'][s] for s in range(n_s)], axis=1)   # (F2, 4F1)
    tsb_sum = jnp.sum(p['tsb'], axis=0)[:, None]                          # (F2, 1)

    n_class, d_in = p['wc'].shape
    f2 = p['tsw'].shape[1]
    tout = d_in // f2
    wc_t = p['wc'].reshape(n_class, f2, tout).transpose(1, 2, 0)          # (F2, Tout, n_class)
    bc = p['bc'].reshape(1, n_class)
    return w_aug, ts_all, tsb_sum, wc_t, bc


def build_input_stack(x):
    """x: (B, C, T)  ->  (B, 12C+1, T//8) tap stack at the surviving time points."""
    B, C, T = x.shape
    tout = T // 8
    xp = jnp.pad(x, ((0, 0), (0, 0), (8, 8)))            # shared zero halo for all scales

    def view(off):                                        # x[8t + off] (0 outside [0, T))
        start = 8 + off
        return jax.lax.slice(xp, (0, 0, start),
                             (B, C, start + 8 * (tout - 1) + 1), (1, 1, 8))

    views = []
    for st in STRIDES:
        views += [view(-st), view(0), view(st)]           # tap order: left, center, right
    ones = jnp.ones((B, 1, tout), x.dtype)                # bias rides the matmul
    return jnp.concatenate(views + [ones], axis=1)        # (B, 12C+1, Tout)


def mgifnet_forward(x, params):
    """x: (B, 1, C, T) NCHW (as in the PyTorch forward) -> (B, n_class) softmax probs."""
    xb = x[:, 0].astype(jnp.float32)                      # (B, C, T)
    B, C, T = xb.shape
    assert T % 8 == 0
    w_aug, ts_all, tsb_sum, wc_t, bc = fold_params(params)
    f2, n_class = wc_t.shape[0], wc_t.shape[2]
    tout = T // 8
    assert wc_t.shape[1] == tout, "classifier in_features must equal F2 * (T // 8)"

    xall = build_input_stack(xb)                          # (B, 12C+1, Tout)
    krows = xall.shape[1]
    rows = w_aug.shape[0]                                 # 4*F1

    out = pl.pallas_call(
        _mgif_kernel,
        out_shape=jax.ShapeDtypeStruct((B, 1, n_class), jnp.float32),
        grid=(B,),
        in_specs=[
            pl.BlockSpec((1, krows, tout), lambda b: (b, 0, 0)),
            pl.BlockSpec((rows, krows), lambda b: (0, 0)),
            pl.BlockSpec((f2, rows), lambda b: (0, 0)),
            pl.BlockSpec((f2, 1), lambda b: (0, 0)),
            pl.BlockSpec((f2, tout, n_class), lambda b: (0, 0, 0)),
            pl.BlockSpec((1, n_class), lambda b: (0, 0)),
        ],
        out_specs=pl.BlockSpec((1, 1, n_class), lambda b: (b, 0, 0)),
        compiler_params=pltpu.CompilerParams(dimension_semantics=("parallel",)),
    )(xall, w_aug, ts_all, tsb_sum, wc_t, bc)
    return out[:, 0, :]


# ---------------------------------------------------------------------------
# Pure-JAX reference (mirrors the PyTorch ops, inference-mode BN / Dropout).
# ---------------------------------------------------------------------------
def reference_forward(x, p):
    xx = x[:, 0].astype(jnp.float32)
    B, C, T = xx.shape
    outs = []
    for i, st in enumerate(STRIDES):
        xs = xx[:, :, ::st]
        Ts = T // st
        xs_pad = jnp.pad(xs, ((0, 0), (0, 0), (1, 1)))
        tw = p['tw'][i]
        y = (tw[None, :, None, 0:1] * xs_pad[:, None, :, 0:Ts]
             + tw[None, :, None, 1:2] * xs_pad[:, None, :, 1:Ts + 1]
             + tw[None, :, None, 2:3] * xs_pad[:, None, :, 2:Ts + 2])     # (B,F1,C,Ts)
        a1 = p['g1'][i] / jnp.sqrt(p['v1'][i] + BN_EPS)
        c1 = p['b1'][i] - p['m1'][i] * a1
        y = a1[None, :, None, None] * y + c1[None, :, None, None]
        z = jnp.einsum('fc,bfcq->bfq', p['sw'][i], y) + p['sb'][i][None, :, None]
        a2 = p['g2'][i] / jnp.sqrt(p['v2'][i] + BN_EPS)
        c2 = p['b2'][i] - p['m2'][i] * a2
        z = a2[None, :, None] * z + c2[None, :, None]
        z = _elu(z)
        u = jnp.einsum('gf,bfq->bgq', p['tsw'][i], z) + p['tsb'][i][None, :, None]
        outs.append(u)
    r = outs[0][:, :, ::2] + outs[1]
    r = r[:, :, ::2] + outs[2]
    r = r[:, :, ::2] + outs[3]
    flat = r.reshape(B, -1)
    logits = flat @ p['wc'].T + p['bc'][None, :]
    return jax.nn.softmax(logits, axis=-1)


# ---------------------------------------------------------------------------
# Deterministic synthetic parameters (shapes per MGIFNet.__init__).
# ---------------------------------------------------------------------------
def init_params(key, C, T, n_class=2, f1=F1, f2=F2):
    tout = T // 8
    ks = jax.random.split(key, 16)

    def nrm(k, shape, s):
        return s * jax.random.normal(k, shape, jnp.float32)

    return dict(
        tw=nrm(ks[0], (N_SCALE, f1, KLEN), 0.3),      # Conv2d(1, F1, (1,3), bias=False)
        sw=nrm(ks[1], (N_SCALE, f1, C), 0.2),         # Conv2d(F1, F1, (C,1), groups=F1)
        sb=nrm(ks[2], (N_SCALE, f1), 0.1),
        g1=1.0 + nrm(ks[3], (N_SCALE, f1), 0.1),      # BatchNorm2d(F1) running stats/affine
        b1=nrm(ks[4], (N_SCALE, f1), 0.1),
        m1=nrm(ks[5], (N_SCALE, f1), 0.1),
        v1=1.0 + jnp.abs(nrm(ks[6], (N_SCALE, f1), 0.1)),
        g2=1.0 + nrm(ks[7], (N_SCALE, f1), 0.1),      # BatchNorm2d(F1*D)
        b2=nrm(ks[8], (N_SCALE, f1), 0.1),
        m2=nrm(ks[9], (N_SCALE, f1), 0.1),
        v2=1.0 + jnp.abs(nrm(ks[10], (N_SCALE, f1), 0.1)),
        tsw=nrm(ks[11], (N_SCALE, f2, f1), 0.2),      # ts_conv 1x1
        tsb=nrm(ks[12], (N_SCALE, f2), 0.1),
        wc=nrm(ks[13], (n_class, f2 * tout), 0.05),   # Linear(128*F2, n_class)
        bc=nrm(ks[14], (n_class,), 0.1),
    )


if __name__ == "__main__":
    key = jax.random.PRNGKey(0)
    # classifier in_features is hard-coded to 128*F2 -> T/8 must be 128 -> T = 1024.
    B, C, T, n_class = 2, 16, 1024, 2
    kx, kp = jax.random.split(key)
    x = jax.random.normal(kx, (B, 1, C, T), jnp.float32)   # NCHW input, as in the PyTorch module
    params = init_params(kp, C, T, n_class)

    fwd = jax.jit(mgifnet_forward)
    out = jax.block_until_ready(fwd(x, params))
    ref = jax.block_until_ready(reference_forward(x, params))

    assert out.shape == (B, n_class) and out.dtype == jnp.float32
    assert bool(jnp.all(jnp.isfinite(out)))
    assert float(jnp.max(jnp.abs(jnp.sum(out, axis=-1) - 1.0))) < 1e-5
    assert float(jnp.max(jnp.abs(out - ref))) < 1e-4, (out, ref)
    print("KERNEL_OK")
</pallas_src>

<mosaic_0001>
module attributes {stable_mosaic.version = 11 : i64} {
  func.func @_mgif_kernel(%arg0: i32, %arg1: memref<1x193x128xf32, #tpu.memory_space<vmem>>, %arg2: memref<32x193xf32, #tpu.memory_space<vmem>>, %arg3: memref<2x32xf32, #tpu.memory_space<vmem>>, %arg4: memref<2x1xf32, #tpu.memory_space<vmem>>, %arg5: memref<2x128x2xf32, #tpu.memory_space<vmem>>, %arg6: memref<1x2xf32, #tpu.memory_space<vmem>>, %arg7: memref<1x1x2xf32, #tpu.memory_space<vmem>>) attributes {dimension_semantics = [#tpu.dimension_semantics<parallel>], iteration_bounds = array<i64: 2>, scalar_prefetch = 0 : i64, scratch_operands = 0 : i64, tpu.core_type = #tpu.core_type<tc>, window_params = [{transform_indices = @transform_0, window_bounds = array<i64: 1, 193, 128>}, {pipeline_mode = #tpu.pipeline_mode<synchronous>, transform_indices = @transform_1, window_bounds = array<i64: 32, 193>}, {pipeline_mode = #tpu.pipeline_mode<synchronous>, transform_indices = @transform_2, window_bounds = array<i64: 2, 32>}, {pipeline_mode = #tpu.pipeline_mode<synchronous>, transform_indices = @transform_3, window_bounds = array<i64: 2, 1>}, {pipeline_mode = #tpu.pipeline_mode<synchronous>, transform_indices = @transform_4, window_bounds = array<i64: 2, 128, 2>}, {pipeline_mode = #tpu.pipeline_mode<synchronous>, transform_indices = @transform_5, window_bounds = array<i64: 1, 2>}, {transform_indices = @transform_6, window_bounds = array<i64: 1, 1, 2>}]} {
    %c0 = arith.constant 0 : index
    %c0_0 = arith.constant 0 : index
    %c0_1 = arith.constant 0 : index
    %0 = vector.load %arg1[%c0, %c0_0, %c0_1] : memref<1x193x128xf32, #tpu.memory_space<vmem>>, vector<1x193x128xf32>
    %1 = vector.shape_cast %0 : vector<1x193x128xf32> to vector<193x128xf32>
    %c0_2 = arith.constant 0 : index
    %c0_3 = arith.constant 0 : index
    %2 = vector.load %arg2[%c0_2, %c0_3] : memref<32x193xf32, #tpu.memory_space<vmem>>, vector<32x193xf32>
    %cst = arith.constant dense<0.000000e+00> : vector<32x128xf32>
    %3 = tpu.matmul %2, %1, %cst {dimension_numbers = #tpu.dot_dimension_numbers<[1], [0], [0], [1], [0, 0, 1, 1], [], []>} : vector<32x193xf32>, vector<193x128xf32>, vector<32x128xf32> -> vector<32x128xf32>
    %cst_4 = arith.constant 0.000000e+00 : f32
    %4 = vector.broadcast %cst_4 : f32 to vector<32x128xf32>
    %5 = arith.cmpf ogt, %3, %4 : vector<32x128xf32>
    %cst_5 = arith.constant 0.000000e+00 : f32
    %6 = vector.broadcast %cst_5 : f32 to vector<32x128xf32>
    %7 = arith.minimumf %3, %6 : vector<32x128xf32>
    %8 = math.exp %7 : vector<32x128xf32>
    %cst_6 = arith.constant 1.000000e+00 : f32
    %9 = vector.broadcast %cst_6 : f32 to vector<32x128xf32>
    %10 = arith.subf %8, %9 : vector<32x128xf32>
    %11 = arith.select %5, %3, %10 : vector<32x128xi1>, vector<32x128xf32>
    %c0_7 = arith.constant 0 : index
    %c0_8 = arith.constant 0 : index
    %12 = vector.load %arg3[%c0_7, %c0_8] : memref<2x32xf32, #tpu.memory_space<vmem>>, vector<2x32xf32>
    %cst_9 = arith.constant dense<0.000000e+00> : vector<2x128xf32>
    %13 = tpu.matmul %12, %11, %cst_9 {dimension_numbers = #tpu.dot_dimension_numbers<[1], [0], [0], [1], [0, 0, 1, 1], [], []>} : vector<2x32xf32>, vector<32x128xf32>, vector<2x128xf32> -> vector<2x128xf32>
    %c0_10 = arith.constant 0 : index
    %c0_11 = arith.constant 0 : index
    %14 = vector.load %arg4[%c0_10, %c0_11] : memref<2x1xf32, #tpu.memory_space<vmem>>, vector<2x1xf32>
    %15 = vector.broadcast %14 : vector<2x1xf32> to vector<2x128xf32>
    %16 = arith.addf %13, %15 : vector<2x128xf32>
    %c0_12 = arith.constant 0 : index
    %c0_13 = arith.constant 0 : index
    %17 = vector.load %arg6[%c0_12, %c0_13] : memref<1x2xf32, #tpu.memory_space<vmem>>, vector<1x2xf32>
    %18 = vector.extract_strided_slice %16 {offsets = [0, 0], sizes = [1, 128], strides = [1, 1]} : vector<2x128xf32> to vector<1x128xf32>
    %c0_14 = arith.constant 0 : index
    %c0_15 = arith.constant 0 : index
    %c0_16 = arith.constant 0 : index
    %19 = vector.load %arg5[%c0_14, %c0_15, %c0_16] : memref<2x128x2xf32, #tpu.memory_space<vmem>>, vector<1x128x2xf32>
    %20 = vector.shape_cast %19 : vector<1x128x2xf32> to vector<128x2xf32>
    %cst_17 = arith.constant dense<0.000000e+00> : vector<1x2xf32>
    %21 = tpu.matmul %18, %20, %cst_17 {dimension_numbers = #tpu.dot_dimension_numbers<[1], [0], [0], [1], [0, 0, 1, 1], [], []>} : vector<1x128xf32>, vector<128x2xf32>, vector<1x2xf32> -> vector<1x2xf32>
    %22 = arith.addf %17, %21 : vector<1x2xf32>
    %23 = vector.extract_strided_slice %16 {offsets = [1, 0], sizes = [1, 128], strides = [1, 1]} : vector<2x128xf32> to vector<1x128xf32>
    %c1 = arith.constant 1 : index
    %c0_18 = arith.constant 0 : index
    %c0_19 = arith.constant 0 : index
    %24 = vector.load %arg5[%c1, %c0_18, %c0_19] : memref<2x128x2xf32, #tpu.memory_space<vmem>>, vector<1x128x2xf32>
    %25 = vector.shape_cast %24 : vector<1x128x2xf32> to vector<128x2xf32>
    %cst_20 = arith.constant dense<0.000000e+00> : vector<1x2xf32>
    %26 = tpu.matmul %23, %25, %cst_20 {dimension_numbers = #tpu.dot_dimension_numbers<[1], [0], [0], [1], [0, 0, 1, 1], [], []>} : vector<1x128xf32>, vector<128x2xf32>, vector<1x2xf32> -> vector<1x2xf32>
    %27 = arith.addf %22, %26 : vector<1x2xf32>
    %cst_21 = arith.constant dense<0xFF800000> : vector<1xf32>
    %28 = vector.multi_reduction <maximumf>, %27, %cst_21 [1] : vector<1x2xf32> to vector<1xf32>
    %29 = vector.shape_cast %28 : vector<1xf32> to vector<1x1xf32>
    %30 = vector.broadcast %29 : vector<1x1xf32> to vector<1x2xf32>
    %31 = arith.subf %27, %30 : vector<1x2xf32>
    %32 = math.exp %31 : vector<1x2xf32>
    %cst_22 = arith.constant dense<0.000000e+00> : vector<1xf32>
    %33 = vector.multi_reduction <add>, %32, %cst_22 [1] : vector<1x2xf32> to vector<1xf32>
    %34 = vector.shape_cast %33 : vector<1xf32> to vector<1x1xf32>
    %35 = vector.broadcast %34 : vector<1x1xf32> to vector<1x2xf32>
    %36 = arith.divf %32, %35 : vector<1x2xf32>
    %c0_23 = arith.constant 0 : index
    %c0_24 = arith.constant 0 : index
    %c0_25 = arith.constant 0 : index
    %37 = vector.load %arg7[%c0_23, %c0_24, %c0_25] : memref<1x1x2xf32, #tpu.memory_space<vmem>>, vector<1x1x2xf32>
    %38 = vector.shape_cast %37 : vector<1x1x2xf32> to vector<1x2xf32>
    %39 = vector.shape_cast %36 : vector<1x2xf32> to vector<1x1x2xf32>
    tpu.vector_store %arg7[%c0_23, %c0_24, %c0_25], %39 {strides = array<i32>} : memref<1x1x2xf32, #tpu.memory_space<vmem>>, vector<1x1x2xf32>,
    return
  }
  func.func @transform_0(%arg0: i32) -> (i32, i32, i32) {
    %c0_i32 = arith.constant 0 : i32
    %c0_i32_0 = arith.constant 0 : i32
    %c0_i32_1 = arith.constant 0 : i32
    return %arg0, %c0_i32, %c0_i32_0 : i32, i32, i32
  }
  func.func @transform_1(%arg0: i32) -> (i32, i32) {
    %c0_i32 = arith.constant 0 : i32
    %c0_i32_0 = arith.constant 0 : i32
    %c0_i32_1 = arith.constant 0 : i32
    return %c0_i32, %c0_i32_0 : i32, i32
  }
  func.func @transform_2(%arg0: i32) -> (i32, i32) {
    %c0_i32 = arith.constant 0 : i32
    %c0_i32_0 = arith.constant 0 : i32
    %c0_i32_1 = arith.constant 0 : i32
    return %c0_i32, %c0_i32_0 : i32, i32
  }
  func.func @transform_3(%arg0: i32) -> (i32, i32) {
    %c0_i32 = arith.constant 0 : i32
    %c0_i32_0 = arith.constant 0 : i32
    %c0_i32_1 = arith.constant 0 : i32
    return %c0_i32, %c0_i32_0 : i32, i32
  }
  func.func @transform_4(%arg0: i32) -> (i32, i32, i32) {
    %c0_i32 = arith.constant 0 : i32
    %c0_i32_0 = arith.constant 0 : i32
    %c0_i32_1 = arith.constant 0 : i32
    %c0_i32_2 = arith.constant 0 : i32
    return %c0_i32, %c0_i32_0, %c0_i32_1 : i32, i32, i32
  }
  func.func @transform_5(%arg0: i32) -> (i32, i32) {
    %c0_i32 = arith.constant 0 : i32
    %c0_i32_0 = arith.constant 0 : i32
    %c0_i32_1 = arith.constant 0 : i32
    return %c0_i32, %c0_i32_0 : i32, i32
  }
  func.func @transform_6(%arg0: i32) -> (i32, i32, i32) {
    %c0_i32 = arith.constant 0 : i32
    %c0_i32_0 = arith.constant 0 : i32
    %c0_i32_1 = arith.constant 0 : i32
    return %arg0, %c0_i32, %c0_i32_0 : i32, i32, i32
  }
}

</mosaic_0001>

<bundles_post_ra>
// kernel: mgifnet_forward.1
= control target key start
LH: loop header
LB: loop body
LE: loop exit
PB: predicated region body
PF: predicated region fallthrough
CT: control target
= control target key end

     0   :  { %11 = vsyncpa [#allocation3], 0  ;;  %s1457_s0 = inlined_call_operand.vmem [shape: f32[2,193,128], index: 0, kind: input, shape index: {}]   ;;  %s1458_s1 = inlined_call_operand.vmem [shape: f32[32,193], index: 1, kind: input, shape index: {}]   ;;  %s1459_s2 = inlined_call_operand.vmem [shape: f32[2,32], index: 2, kind: input, shape index: {}]   ;;  %s1460_s3 = inlined_call_operand.vmem [shape: f32[2,1], index: 3, kind: input, shape index: {}]   ;;  %s1461_s4 = inlined_call_operand.vmem [shape: f32[2,128,2], index: 4, kind: input, shape index: {}]   ;;  %s1462_s5 = inlined_call_operand.vmem [shape: f32[1,2], index: 5, kind: input, shape index: {}]   ;;  %s1463_s6 = inlined_call_operand.hbm [shape: f32[2,1,2], index: 6, kind: output, shape index: {}]  }
   0x1   :  { %13 = vsyncpa [#allocation3 + $0x1], 0  ;;  %s1157_s21 = smov 0   ;;  %s1159_s22 = smov 0  }
   0x2   :  { %s1161_s23 = smov 0   ;;  %s1163_s24 = smov 0  }
   0x3 LB: > { %s1178_s25 = sadd.s32 4294967295, %s1115_s24   ;;  %s749_s26 = sadd.s32 4294967294, %s1115_s24   ;;  %s1115_s24 = sphi %s1163_s24, %s1469_s24   ;;  %s1111_s23 = sphi %s1161_s23, %s1468_s23   ;;  %s1107_s22 = sphi %s1159_s22, %s1467_s22   ;;  %s1103_s21 = sphi %s1157_s21, %s1466_s21  }
   0x4   : > { %s1182_s27 = sadd.s32 1, %s1115_s24   ;;  %s157_s28 = sadd.s32 1, %s1111_s23 }
   0x5   : > { %s154_s29 = ssub.s32 %s1115_s24, %s1182_s27  ;;  %p167_p0 = scmp.ne.s32.totalorder %s1111_s23, %s1107_s22 }
   0x6   : > { %p155_p1 = scmp.eq.s32.totalorder %s154_s29, 0  ;;  %p168_p2 = scmp.eq.s32.totalorder %s1178_s25, 1 }
   0x7   : > { %p173_p3 = scmp.ne.s32.totalorder %s1107_s22, %s1103_s21  ;;  %p174_p4 = scmp.eq.s32.totalorder %s749_s26, 1 }
   0x8   : > { %s1193_s30 = scalar_select %p155_p1, %s1111_s23, %s157_s28  }
   0x9   : > { %p1195_p5 = por %p168_p2, %p167_p0  ;;  %p1199_p6 = por %p174_p4, %p173_p3 }
   0xa   : > { %p752_p7 = scmp.ge.s32.totalorder %s1115_s24, 1  ;;  %p215_p8 = scmp.lt.s32.totalorder %s1115_s24, 3 }
   0xc   : > { %p216_p9 = pnand %p752_p7, %p215_p8 }
   0xd   : > { %p244_p10 = scmp.lt.s32.totalorder (!%p216_p9), %s1178_s25, 1  ;;  %v275_v0 = vld [vmem:[%s1458_s1 + $0x8] sm:$0xff] (!%p216_p9)  ;;  %vm282_vm0 = vcmask (!%p216_p9), 531456   ;;  %v1117_v1 = vmov (!%p216_p9), 0.0|0.0   ;;  %v1118_v38 = vmov (!%p216_p9), 0.0   ;;  %vm295_vm1 = vcmask (!%p216_p9), 1040384  }
   0xe   : > { %219 = sbr.rel (%p216_p9) target bundleno = 1113 (0x459), region = 44  ;;  %903 = vmatprep.subr.bf16.mxu0 (!%p216_p9), %v1117_v1  ;;  %755 = vmatprep.mubr.msk.f32.mxu0 (!%p216_p9), %vm282_vm0, %v275_v0  ;;  %v274_v40 = vld [vmem:[%s1458_s1] sm:$0xff] (!%p216_p9)  ;;  %v277_v41 = vld [vmem:[%s1458_s1 + $0x18] sm:$0xff] (!%p216_p9)  ;;  %v276_v42 = vld [vmem:[%s1458_s1 + $0x10] sm:$0xff] (!%p216_p9)  ;;  %vm1119_vm2 = vmmov (!%p216_p9), 0   ;;  %v1120_v50 = vmov (!%p216_p9), 0  }
   0xf   : > { %945 = vmatprep.subr.bf16.mxu1 (!%p216_p9), %v1117_v1  ;;  %v279_v43 = vld [vmem:[%s1458_s1 + $0x28] sm:$0xff] (!%p216_p9)  ;;  %v278_v44 = vld [vmem:[%s1458_s1 + $0x20] sm:$0xff] (!%p216_p9)  ;;  %v281_v45 = vld [vmem:[%s1458_s1 + $0x38] sm:$0xff] (!%p216_p9)  ;;  %865 = vmatprep.mubr.msk.f32.mxu1 (!%p216_p9), %vm1119_vm2, %v1118_v38  ;;  %vm415_vm7 = vcmask (!%p216_p9), 261120   ;;  %vm668_vm8 = vcmask (!%p216_p9), 8192   ;;  %s242_s10 = sand.u32 (!%p216_p9), 1, %s1107_s22  }
  0x10   : > { %v280_v46 = vld [vmem:[%s1458_s1 + $0x30] sm:$0xff] (!%p216_p9)  ;;  %v409_v47 = vld [vmem:[%s1460_s3] sm:$0x3] (!%p216_p9)  ;;  %v491_v49 = vld [vmem:[%s1461_s4 + $0x8] sm:$0xff] (!%p216_p9)  ;;  %1040 = vset.pattern.permute.xlu0 (!%p216_p9), %v1120_v50  ;;  %s682_s17 = scalar_lea.sflag (!%p216_p9), [#allocation3], %s242_s10 }
  0x11   : > { %v490_v48 = vld [vmem:[%s1461_s4] sm:$0xff] (!%p216_p9)  ;;  %v492_v52 = vld [vmem:[%s1461_s4 + $0x10] sm:$0xff] (!%p216_p9)  ;;  %v493_v53 = vld [vmem:[%s1461_s4 + $0x18] sm:$0xff] (!%p216_p9)  ;;  %412 = vperm.xlu0 (!%p216_p9), %1040, %v409_v47  }
  0x12   : > { %v946_v51 = vpack.c.bf16 (!%p216_p9), %v491_v49, %v490_v48  ;;  %v949_v54 = vpack.c.bf16 (!%p216_p9), %v493_v53, %v492_v52  ;;  %v494_v55 = vld [vmem:[%s1461_s4 + $0x20] sm:$0xff] (!%p216_p9)  ;;  %v495_v56 = vld [vmem:[%s1461_s4 + $0x28] sm:$0xff] (!%p216_p9)  ;;  %v496_v58 = vld [vmem:[%s1461_s4 + $0x30] sm:$0xff] (!%p216_p9) }
  0x13   : > { %v952_v57 = vpack.c.bf16 (!%p216_p9), %v495_v56, %v494_v55  ;;  %v497_v59 = vld [vmem:[%s1461_s4 + $0x38] sm:$0xff] (!%p216_p9)  ;;  %v498_v61 = vld [vmem:[%s1461_s4 + $0x40] sm:$0xff] (!%p216_p9)  ;;  %v499_v62 = vld [vmem:[%s1461_s4 + $0x48] sm:$0xff] (!%p216_p9) }
  0x14   : > { %947 = vmatpush3.bf16.msra.mxu1 (!%p216_p9), %v946_v51  ;;  %v955_v60 = vpack.c.bf16 (!%p216_p9), %v497_v59, %v496_v58  ;;  %v958_v63 = vpack.c.bf16 (!%p216_p9), %v499_v62, %v498_v61  ;;  %v500_v0 = vld [vmem:[%s1461_s4 + $0x50] sm:$0xff] (!%p216_p9)  ;;  %v767_v50 = vld [vmem:[%s1461_s4 + $0x98] sm:$0xff] (!%p216_p9)  ;;  %v768_v52 = vld [vmem:[%s1461_s4 + $0xa0] sm:$0xff] (!%p216_p9) }
  0x15   : > { %s245_s11 = scalar_select %p244_p10, %s1178_s25, 1  ;;  %948 = vmatprep.subr.bf16.mxu1 %v1117_v1  ;;  %v766_v49 = vld [vmem:[%s1461_s4 + $0x90] sm:$0xff]  ;;  %v769_v53 = vld [vmem:[%s1461_s4 + $0xa8] sm:$0xff]  ;;  %v775_v61 = vld [vmem:[%s1461_s4 + $0xd8] sm:$0xff] }
  0x16   : > { %v973_v51 = vpack.c.bf16 %v767_v50, %v766_v49  ;;  %v770_v55 = vld [vmem:[%s1461_s4 + $0xb0] sm:$0xff]  ;;  %v773_v58 = vld [vmem:[%s1461_s4 + $0xc8] sm:$0xff] }
  0x17   : > { %s996_s12 = smul.u32 200, %s245_s11  ;;  %s780_s11 = sshll.u32 %s1178_s25, 4 }
  0x18   : > { %950 = vmatpush3.bf16.msra.mxu1 %v949_v54  ;;  %v976_v54 = vpack.c.bf16 %v769_v53, %v768_v52  ;;  %s1414_s16 = scalar_lea.hbm %s1463_s6, %s780_s11  ;;  %s1121_s25 = smov [#allocation2]  }
  0x19   : > { %s1216_s15 = scalar_lea.vmem %s1457_s0, %s996_s12  ;;  %951 = vmatprep.subr.bf16.mxu1 %v1117_v1  ;;  %s243_s12 = scalar_lea.vmem [#allocation2], %s242_s10 }
  0x1a   : > { %v249_v2 = vld [vmem:[%s1216_s15] sm:$0xff]  ;;  %v250_v3 = vld [vmem:[%s1216_s15 + $0x8] sm:$0xff]  ;;  %v251_v4 = vld [vmem:[%s1216_s15 + $0x10] sm:$0xff]  ;;  %s694_s13 = sshll.u32 %s243_s12, 4  ;;  %s1057_s19 = sshll.u32 %s1121_s25, 4  ;;  %s1416_s13 = int_to_ptr.vmem [resolvable:$true] %s694_s13  ;;  %s1058_s19 = int_to_ptr.vmem [resolvable:$false] %s1057_s19 }
  0x1b   : > { %v904_v5 = vpack.c.bf16 %v250_v3, %v249_v2  ;;  %v252_v6 = vld [vmem:[%s1216_s15 + $0x18] sm:$0xff]  ;;  %v253_v8 = vld [vmem:[%s1216_s15 + $0x20] sm:$0xff]  ;;  %v254_v9 = vld [vmem:[%s1216_s15 + $0x28] sm:$0xff]  ;;  %s1053_s18 = scalar_lea.vmem %s1416_s13, 16  ;;  %s1059_s20 = scalar_lea.vmem %s1058_s19, 32 }
  0x1c   : > { %v907_v7 = vpack.c.bf16 %v252_v6, %v251_v4  ;;  %v910_v10 = vpack.c.bf16 %v254_v9, %v253_v8  ;;  %v255_v11 = vld [vmem:[%s1216_s15 + $0x30] sm:$0xff]  ;;  %v256_v12 = vld [vmem:[%s1216_s15 + $0x38] sm:$0xff]  ;;  %v257_v14 = vld [vmem:[%s1216_s15 + $0x40] sm:$0xff]  ;;  %953 = vmatpush3.bf16.msra.mxu1 %v952_v57  ;;  %p1054_p11 = scmp.ne.s32.totalorder %s1416_s13, %s1053_s18  ;;  %p1060_p0 = scmp.lt.s32.totalorder %s1416_s13, %s1058_s19 }
  0x1d   : > { %905 = vmatpush1.bf16.msra.mxu0 %v904_v5  ;;  %v913_v13 = vpack.c.bf16 %v256_v12, %v255_v11  ;;  %v258_v15 = vld [vmem:[%s1216_s15 + $0x48] sm:$0xff]  ;;  %v259_v17 = vld [vmem:[%s1216_s15 + $0x50] sm:$0xff]  ;;  %v260_v18 = vld [vmem:[%s1216_s15 + $0x58] sm:$0xff]  ;;  %954 = vmatprep.subr.bf16.mxu1 %v1117_v1  ;;  %p1061_p1 = scmp.lt.s32.totalorder %s1059_s20, %s1053_s18 }
  0x1e   : > { %906 = vmatprep.subr.bf16.mxu0 %v1117_v1  ;;  %v916_v16 = vpack.c.bf16 %v258_v15, %v257_v14  ;;  %v919_v19 = vpack.c.bf16 %v260_v18, %v259_v17  ;;  %v261_v20 = vld [vmem:[%s1216_s15 + $0x60] sm:$0xff]  ;;  %v262_v21 = vld [vmem:[%s1216_s15 + $0x68] sm:$0xff]  ;;  %v263_v23 = vld [vmem:[%s1216_s15 + $0x70] sm:$0xff]  ;;  %p1055_p12 = pnand %p1054_p11, %p1195_p5 }
  0x1f   : > { %v922_v22 = vpack.c.bf16 %v262_v21, %v261_v20  ;;  %v264_v24 = vld [vmem:[%s1216_s15 + $0x78] sm:$0xff]  ;;  %v265_v26 = vld [vmem:[%s1216_s15 + $0x80] sm:$0xff]  ;;  %v266_v27 = vld [vmem:[%s1216_s15 + $0x88] sm:$0xff]  ;;  %p1062_p2 = por %p1061_p1, %p1060_p0 }
  0x20   : > { %v925_v25 = vpack.c.bf16 %v264_v24, %v263_v23  ;;  %v928_v28 = vpack.c.bf16 %v266_v27, %v265_v26  ;;  %v267_v29 = vld [vmem:[%s1216_s15 + $0x90] sm:$0xff]  ;;  %v268_v30 = vld [vmem:[%s1216_s15 + $0x98] sm:$0xff]  ;;  %v269_v32 = vld [vmem:[%s1216_s15 + $0xa0] sm:$0xff]  ;;  %956 = vmatpush3.bf16.msra.mxu1 %v955_v60  ;;  %p1056_p13 = pneg %p1055_p12 }
  0x21   : > { %908 = vmatpush1.bf16.msra.mxu0 %v907_v7  ;;  %v931_v31 = vpack.c.bf16 %v268_v30, %v267_v29  ;;  %v270_v33 = vld [vmem:[%s1216_s15 + $0xa8] sm:$0xff]  ;;  %v271_v35 = vld [vmem:[%s1216_s15 + $0xb0] sm:$0xff]  ;;  %v272_v36 = vld [vmem:[%s1216_s15 + $0xb8] sm:$0xff]  ;;  %957 = vmatprep.subr.bf16.mxu1 %v1117_v1 }
  0x22   : > { %909 = vmatprep.subr.bf16.mxu0 %v1117_v1  ;;  %v934_v34 = vpack.c.bf16 %v270_v33, %v269_v32  ;;  %v937_v37 = vpack.c.bf16 %v272_v36, %v271_v35  ;;  %v273_v39 = vld [vmem:[%s1216_s15 + $0xc0] sm:$0x1]  ;;  %v501_v2 = vld [vmem:[%s1461_s4 + $0x58] sm:$0xff]  ;;  %v503_v5 = vld [vmem:[%s1461_s4 + $0x68] sm:$0xff]  ;;  %p1063_p3 = pnand %p1062_p2, %p1056_p13 }
  0x23   : > { %v961_v3 = vpack.c.bf16 %v501_v2, %v500_v0  ;;  %v502_v4 = vld [vmem:[%s1461_s4 + $0x60] sm:$0xff]  ;;  %v504_v7 = vld [vmem:[%s1461_s4 + $0x70] sm:$0xff]  ;;  %v505_v8 = vld [vmem:[%s1461_s4 + $0x78] sm:$0xff] }
  0x24   : > { %959 = vmatpush3.bf16.msra.mxu1 %v958_v63  ;;  %v964_v6 = vpack.c.bf16 %v503_v5, %v502_v4  ;;  %v967_v9 = vpack.c.bf16 %v505_v8, %v504_v7  ;;  %v772_v57 = vld [vmem:[%s1461_s4 + $0xc0] sm:$0xff]  ;;  %v774_v60 = vld [vmem:[%s1461_s4 + $0xd0] sm:$0xff]  ;;  %v777_v0 = vld [vmem:[%s1461_s4 + $0xe8] sm:$0xff] }
  0x25   : > { %911 = vmatpush1.bf16.msra.mxu0 %v910_v10  ;;  %960 = vmatprep.subr.bf16.mxu1 %v1117_v1  ;;  %v982_v59 = vpack.c.bf16 %v773_v58, %v772_v57  ;;  %v985_v62 = vpack.c.bf16 %v775_v61, %v774_v60  ;;  %v776_v63 = vld [vmem:[%s1461_s4 + $0xe0] sm:$0xff]  ;;  %v779_v4 = vld [vmem:[%s1461_s4 + $0xf8] sm:$0xff] }
  0x26   : > { %912 = vmatprep.subr.bf16.mxu0 %v1117_v1  ;;  %v988_v2 = vpack.c.bf16 %v777_v0, %v776_v63  ;;  %v489_v7 = vld [vmem:[%s1462_s5] sm:$0x1] }
  0x28   : > { %962 = vmatpush3.bf16.msra.mxu1 %v961_v3  ;;  %v778_v3 = vld [vmem:[%s1461_s4 + $0xf0] sm:$0xff] }
  0x29   : > { %914 = vmatpush1.bf16.msra.mxu0 %v913_v13  ;;  %963 = vmatprep.subr.bf16.mxu1 %v1117_v1  ;;  %v991_v5 = vpack.c.bf16 %v779_v4, %v778_v3 }
  0x2a   : > { %915 = vmatprep.subr.bf16.mxu0 %v1117_v1 }
  0x2c   : > { %965 = vmatpush3.bf16.msra.mxu1 %v964_v6 }
  0x2d   : > { %917 = vmatpush1.bf16.msra.mxu0 %v916_v16  ;;  %966 = vmatprep.subr.bf16.mxu1 %v1117_v1 }
  0x2e   : > { %918 = vmatprep.subr.bf16.mxu0 %v1117_v1 }
  0x30   : > { %968 = vmatpush3.bf16.msra.mxu1 %v967_v9 }
  0x31   : > { %920 = vmatpush1.bf16.msra.mxu0 %v919_v19  ;;  %969 = vmatprep.subr.bf16.mxu1 %v1117_v1 }
  0x32   : > { %921 = vmatprep.subr.bf16.mxu0 %v1117_v1 }
  0x35   : > { %923 = vmatpush1.bf16.msra.mxu0 %v922_v22 }
  0x36   : > { %924 = vmatprep.subr.bf16.mxu0 %v1117_v1 }
  0x39   : > { %926 = vmatpush1.bf16.msra.mxu0 %v925_v25 }
  0x3a   : > { %927 = vmatprep.subr.bf16.mxu0 %v1117_v1 }
  0x3d   : > { %929 = vmatpush1.bf16.msra.mxu0 %v928_v28 }
  0x3e   : > { %930 = vmatprep.subr.bf16.mxu0 %v1117_v1 }
  0x41   : > { %932 = vmatpush1.bf16.msra.mxu0 %v931_v31 }
  0x42   : > { %933 = vmatprep.subr.bf16.mxu0 %v1117_v1 }
  0x45   : > { %935 = vmatpush1.bf16.msra.mxu0 %v934_v34 }
  0x46   : > { %936 = vmatprep.subr.bf16.mxu0 %v1117_v1 }
  0x49   : > { %938 = vmatpush1.bf16.msra.mxu0 %v937_v37 }
  0x4a   : > { %347 = vmatprep.subr.mxu0 %v1118_v38 }
  0x4d   : > { %754 = vmatpush1.msk.msra.mxu0 %vm295_vm1, %v273_v39 }
  0x4e   : > { %364 = vmatmul.mubr.f32.vlgmr.msra.gmra.mrb[0].mxu0 %v274_v40  ;;  %939 = vmatprep.subr.bf16.mxu0 %v1117_v1 }
  0x4f   : > { %756 = vmatprep.mubr.msk.f32.mxu0 %vm282_vm0, %v277_v41  ;;  %v408_v41 = vld [vmem:[%s1459_s2] sm:$0x3] }
  0x52   : > { %369 = vmatmul.mubr.f32.gmra.mrb[2].mxu0 %v276_v42  ;;  %v764_v42 = vld [vmem:[%s1461_s4 + $0x80] sm:$0xff] }
  0x53   : > { %757 = vmatprep.mubr.msk.f32.mxu0 %vm282_vm0, %v279_v43  ;;  %v765_v43 = vld [vmem:[%s1461_s4 + $0x88] sm:$0xff] }
  0x56   : > { %374 = vmatmul.mubr.f32.gmra.mrb[4].mxu0 %v278_v44 }
  0x57   : > { %758 = vmatprep.mubr.msk.f32.mxu0 %vm282_vm0, %v281_v45 }
  0x5a   : > { %379 = vmatmul.mubr.f32.gmra.mrb[6].mxu0 %v280_v46  ;;  %v970_v46 = vpack.c.bf16 %v765_v43, %v764_v42 }
  0x5b   : > { %830 = vmatprep.mubr.msk.f32.mxu0 %vm1119_vm2, %v1118_v38 }
  0x90   : > { %v413_v44 = vpop.permute.xlu0 %412 }
 0x121   : > { %v365_v10 = vpop.f32.mrb[0].mxu0 }
 0x122   : > { %v388_v11 = vmin.f32 %v365_v10, 0.0  ;;  %v367_v12 = vpop.f32.mrb[1].mxu0  ;;  %vm384_vm3 = vcmp.gt.f32.partialorder %v365_v10, 0.0 }
 0x124   : > { %v392_v13 = vmul.f32 1.442695, %v388_v11 }
 0x125   : > { %v370_v14 = vpop.f32.mrb[2].mxu0 }
 0x126   : > { %1041 = vpow2.f32 %v392_v13  ;;  %v389_v15 = vmin.f32 %v370_v14, 0.0  ;;  %v372_v16 = vpop.f32.mrb[3].mxu0  ;;  %vm385_vm4 = vcmp.gt.f32.partialorder %v370_v14, 0.0 }
 0x128   : > { %v394_v17 = vmul.f32 1.442695, %v389_v15 }
 0x129   : > { %v375_v18 = vpop.f32.mrb[4].mxu0 }
 0x12a   : > { %1043 = vpow2.f32 %v394_v17  ;;  %v390_v19 = vmin.f32 %v375_v18, 0.0  ;;  %v377_v20 = vpop.f32.mrb[5].mxu0  ;;  %vm386_vm5 = vcmp.gt.f32.partialorder %v375_v18, 0.0 }
 0x12c   : > { %v396_v21 = vmul.f32 1.442695, %v390_v19 }
 0x12d   : > { %v380_v22 = vpop.f32.mrb[6].mxu0 }
 0x12e   : > { %1045 = vpow2.f32 %v396_v21  ;;  %v391_v23 = vmin.f32 %v380_v22, 0.0  ;;  %v382_v24 = vpop.f32.mrb[7].mxu0  ;;  %vm387_vm6 = vcmp.gt.f32.partialorder %v380_v22, 0.0 }
 0x130   : > { %v1042_v25 = vpop.eup %1041  ;;  %v398_v26 = vmul.f32 1.442695, %v391_v23 }
 0x131   : > { %v759_v27 = vadd.f32 -1.0, %v1042_v25 }
 0x132   : > { %1047 = vpow2.f32 %v398_v26 }
 0x133   : > { %v404_v30 = vsel %vm384_vm3, %v365_v10, %v759_v27 }
 0x134   : > { %v1044_v28 = vpop.eup %1043 }
 0x135   : > { %v760_v29 = vadd.f32 -1.0, %v1044_v28 }
 0x137   : > { %v405_v31 = vsel %vm385_vm4, %v370_v14, %v760_v29 }
 0x138   : > { %v1046_v32 = vpop.eup %1045  ;;  %v940_v33 = vpack.c.bf16 %v405_v31, %v404_v30 }
 0x139   : > { %v761_v34 = vadd.f32 -1.0, %v1046_v32 }
 0x13a   : > { %941 = vmatpush3.bf16.msra.mxu0 %v940_v33 }
 0x13b   : > { %942 = vmatprep.subr.bf16.mxu0 %v1117_v1  ;;  %v406_v37 = vsel %vm386_vm5, %v375_v18, %v761_v34 }
 0x13c   : > { %v1048_v35 = vpop.eup %1047 }
 0x13d   : > { %v762_v36 = vadd.f32 -1.0, %v1048_v35 }
 0x13f   : > { %v407_v39 = vsel %vm387_vm6, %v380_v22, %v762_v36 }
 0x140   : > { %v943_v40 = vpack.c.bf16 %v407_v39, %v406_v37 }
 0x142   : > { %944 = vmatpush3.bf16.msra.mxu0 %v943_v40 }
 0x145   : > { %831 = vmatmul.mubr.msk.f32.vlgmr.msra.gmra.mrb[8].mxu0 %vm415_vm7, %v408_v41 }
 0x218   : > { %v485_v45 = vpop.f32.mrb[8].mxu0 }
 0x219   : > { %v486_v47 = vadd.f32 %v485_v45, %v413_v44  ;;  %v832_v48 = vpop.f32.mrb[9].mxu0 }
 0x21b   : > { %866 = vmatmul.mubr.f32.vlgmr.msra.gmra.mrb[0].mxu1 %v486_v47  ;;  %v595_v6 = vrot.slane %v486_v47, 1 }
 0x21c   : > { %971 = vmatpush3.bf16.msra.mxu1 %v970_v46  ;;  %900 = vmatprep.mubr.msk.f32.mxu1 %vm1119_vm2, %v1118_v38  ;;  %v771_v38 = vld [vmem:[%s1461_s4 + $0xb8] sm:$0xff] }
 0x21d   : > { %972 = vmatprep.subr.bf16.mxu1 %v1117_v1  ;;  %v979_v56 = vpack.c.bf16 %v771_v38, %v770_v55 }
 0x220   : > { %974 = vmatpush3.bf16.msra.mxu1 %v973_v51 }
 0x221   : > { %975 = vmatprep.subr.bf16.mxu1 %v1117_v1 }
 0x224   : > { %977 = vmatpush3.bf16.msra.mxu1 %v976_v54 }
 0x225   : > { %978 = vmatprep.subr.bf16.mxu1 %v1117_v1 }
 0x228   : > { %980 = vmatpush3.bf16.msra.mxu1 %v979_v56 }
 0x229   : > { %981 = vmatprep.subr.bf16.mxu1 %v1117_v1 }
 0x22c   : > { %983 = vmatpush3.bf16.msra.mxu1 %v982_v59 }
 0x22d   : > { %984 = vmatprep.subr.bf16.mxu1 %v1117_v1 }
 0x230   : > { %986 = vmatpush3.bf16.msra.mxu1 %v985_v62 }
 0x231   : > { %987 = vmatprep.subr.bf16.mxu1 %v1117_v1 }
 0x234   : > { %989 = vmatpush3.bf16.msra.mxu1 %v988_v2 }
 0x235   : > { %990 = vmatprep.subr.bf16.mxu1 %v1117_v1 }
 0x238   : > { %992 = vmatpush3.bf16.msra.mxu1 %v991_v5 }
 0x23b   : > { %901 = vmatmul.mubr.f32.vlgmr.msra.gmra.mrb[0].mxu1 %v595_v6 }
 0x30e   : > { %v663_v8 = vpop.f32.mrb[0].mxu1 }
 0x30f   : > { %v993_v9 = vadd.f32 %v663_v8, %v489_v7  ;;  %v902_v10 = vpop.f32.mrb[1].mxu1 }
 0x311   : > { %v669_v11 = vsel %vm668_vm8, %v993_v9, -inf }
 0x312   : > { %670 = vmax.xlane.f32.xlu0 %v669_v11 }
 0x39f   : > { %v671_v12 = vpop.xlane.xlu0 %670 }
 0x3a0   : > { %v672_v13 = vsub.f32 %v993_v9, %v671_v12 }
 0x3a2   : > { %v673_v14 = vmul.f32 1.442695, %v672_v13 }
 0x3a4   : > { %1049 = vpow2.f32 %v673_v14 }
 0x3ae   : > { %v1050_v1 = vpop.eup %1049 }
 0x3af   : > { %v675_v15 = vsel %vm668_vm8, %v1050_v1, 0.0 }
 0x3b0   : > { %676 = vadd.xlane.f32.xlu1 %v675_v15 }
 0x43d   : > { %v677_v16 = vpop.xlane.xlu1 %676 }
 0x43e   : > { %1051 = vrcp.f32 %v677_v16 }
 0x448   : > { %v1052_v17 = vpop.eup %1051 }
 0x449   : > { %v679_v18 = vmul.f32 %v1052_v17, %v1050_v1 }
 0x44b   : > { %680 = vst.msk [vmem:[%s243_s12] sm:$0x1] %vm668_vm8, %v679_v18 }
 0x44c   : > { %1066 = shalt.err (!%p1063_p3)
}
 0x44d   : > { %s1067_s26 = scalar_lea.hbm %s1414_s16, 16  ;;  %s1071_s9 = scalar_lea.hbm %s1463_s6, 32 }
 0x44e   : > { %p1068_p4 = scmp.ne.s32.totalorder %s1414_s16, %s1067_s26  ;;  %p1072_p9 = scmp.lt.u32.totalorder %s1414_s16, %s1463_s6 }
 0x44f   : > { %p1073_p10 = scmp.lt.u32.totalorder %s1071_s9, %s1067_s26  ;;  %p1075_p12 = scmp.lt.u32.totalorder %s1067_s26, %s1414_s16 }
 0x450   : > { %p1069_p7 = pnand %p1068_p4, %p1195_p5 }
 0x451   : > { %p1074_p11 = por %p1073_p10, %p1072_p9 }
 0x452   : > { %p1070_p8 = pneg %p1069_p7 }
 0x453   : > { %p1076_p13 = por %p1075_p12, %p1074_p11 }
 0x455   : > { %p1077_p0 = pnand %p1076_p13, %p1070_p8 }
 0x457   : > { %1080 = shalt.err (!%p1077_p0)
}
 0x458   : > { %997 = dma.vmem_to_hbm [thread:$0]  (%p1195_p5), %s1416_s13, 16, %s1414_s16, %s682_s17  }
 0x459 PF: > { %p1003_p1 = scmp.ge.s32.totalorder %s1115_s24, 2  ;;  %s706_s12 = sand.u32 1, %s1103_s21  }
 0x45a   : > { %s707_s14 = scalar_lea.sflag [#allocation3], %s706_s12 }
 0x45b   : > { %p1000_p2 = pnand %p1003_p1, %p1199_p6 }
 0x45d   : > { %1098 = dma.done.wait (!%p1000_p2), %s707_s14, 16  }
 0x45e   : > { %1100 = vsyncadd (!%p1000_p2), %s707_s14, 4294967280  ;;  %p16_p3 = scmp.ge.s32.totalorder %s1182_s27, 4   ;;  %s1466_s21 = smov %s1107_s22 }
 0x45f   : > { %s1467_s22 = smov %s1111_s23  ;;  %s1468_s23 = smov %s1193_s30 }
 0x460   : > { %s1469_s24 = smov %s1182_s27  ;;  %18 = sbr.rel (!%p16_p3) target bundleno = 3 (0x3), region = 80 }
 0x467   :  { %711 = vsyncpa [#allocation3], 1 }
 0x468   :  { %713 = vsyncpa [#allocation3 + $0x1], 1 }

</bundles_post_ra>
